<compile_context>
chip_gen: v5e
topology: v5e:2x2
jax: 0.10.0
libtpu: 0.0.40
codegen_flags: <defaults>
</compile_context>

<pallas_src>
import functools

import jax
import jax.numpy as jnp
from jax.experimental import pallas as pl
from jax.experimental.pallas import tpu as pltpu


# ------------------------------- kernel ------------------------------------

def gnn_kernel(p_ref, x_ref, w1_ref, b1_ref, wlin_ref, blin_ref, o_ref, acc_ref,
               *, agg_dtype):
    """One node-tile of the fused GCN forward.

    p_ref   : (G, TN)        tile of P = pool @ adj_hat
    x_ref   : (TN, in_dim)   tile of node features
    w1_ref  : (in_dim, hid)  GCNConv weight
    b1_ref  : (1, hid)       GCNConv bias
    wlin_ref: (hid, out_dim) final Linear weight
    blin_ref: (1, out_dim)   final Linear bias
    o_ref   : (G, out_dim)   output (resident across the reduction grid axis)
    acc_ref : (G, hid)       f32 VMEM accumulator
    """
    k = pl.program_id(0)

    @pl.when(k == 0)
    def _init():
        acc_ref[...] = jnp.zeros_like(acc_ref)

    # GCNConv feature transform on this node tile: xw = X_tile @ W1 + b1.
    xw = jnp.dot(x_ref[...], w1_ref[...], preferred_element_type=jnp.float32)
    xw = xw + b1_ref[...]                      # broadcast (1, hid) over the tile rows
    # layer == 1  ->  no ReLU (the module applies ReLU only for i != layer-1).

    # Fused (pool @ adj_hat) aggregation, accumulated over node tiles.
    p = p_ref[...]
    if agg_dtype != jnp.float32:               # v6e/v7x bf16 MXU fast path (f32 accumulate)
        p = p.astype(agg_dtype)
        xw = xw.astype(agg_dtype)
    acc_ref[...] += jnp.dot(p, xw, preferred_element_type=jnp.float32)

    @pl.when(k == pl.num_programs(0) - 1)
    def _finalize():
        # F.dropout(p=0.2, training=False) is the identity at inference time.
        # TODO(synk): training-mode dropout (stochastic mask) not implemented.
        out = jnp.dot(acc_ref[...], wlin_ref[...], preferred_element_type=jnp.float32)
        o_ref[...] = (out + blin_ref[...]).astype(o_ref.dtype)


# ------------------------------- wrapper ------------------------------------

def gnn_forward(x, w1, b1, adj_hat, pool, wlin, blin,
                *, node_tile=128, agg_dtype=jnp.float32):
    """Fused GCN(layer=1) + global_add_pool + Linear forward."""
    N, in_dim = x.shape
    hid = w1.shape[1]
    G = pool.shape[0]
    out_dim = wlin.shape[1]

    b1 = b1.reshape(1, hid).astype(jnp.float32)
    blin = blin.reshape(1, out_dim).astype(jnp.float32)

    # Algebraic fold (valid because layer=1 => no ReLU between conv and pooling):
    #   pool @ (adj_hat @ XW)  ==  (pool @ adj_hat) @ XW
    p = jnp.dot(pool, adj_hat)                             # [G, N]

    # Pad the node (contraction) dimension to a multiple of the tile size.
    # Padded P columns are zero, so padded X rows (and the bias broadcast onto
    # them) contribute nothing to the accumulator.
    n_pad = pl.cdiv(N, node_tile) * node_tile
    if n_pad != N:
        x = jnp.pad(x, ((0, n_pad - N), (0, 0)))
        p = jnp.pad(p, ((0, 0), (0, n_pad - N)))

    grid = (n_pad // node_tile,)
    kernel = functools.partial(gnn_kernel, agg_dtype=agg_dtype)

    return pl.pallas_call(
        kernel,
        out_shape=jax.ShapeDtypeStruct((G, out_dim), jnp.float32),
        grid_spec=pltpu.PrefetchScalarGridSpec(
            num_scalar_prefetch=0,
            grid=grid,
            in_specs=[
                pl.BlockSpec((G, node_tile), lambda k: (0, k)),        # P tile
                pl.BlockSpec((node_tile, in_dim), lambda k: (k, 0)),   # X tile
                pl.BlockSpec((in_dim, hid), lambda k: (0, 0)),         # W1
                pl.BlockSpec((1, hid), lambda k: (0, 0)),              # b1
                pl.BlockSpec((hid, out_dim), lambda k: (0, 0)),        # Wlin
                pl.BlockSpec((1, out_dim), lambda k: (0, 0)),          # blin
            ],
            out_specs=pl.BlockSpec((G, out_dim), lambda k: (0, 0)),
            scratch_shapes=[pltpu.VMEM((G, hid), jnp.float32)],
        ),
        compiler_params=pltpu.CompilerParams(
            # Single grid axis is the node-reduction axis (accumulator resident
            # across it) -> "arbitrary".  For large batched-graph workloads a
            # leading "parallel" axis over graph tiles would shard across v7x's
            # two TensorCores.
            dimension_semantics=("arbitrary",),
            vmem_limit_bytes=32 * 1024 * 1024,
        ),
    )(p, x, w1, b1, wlin, blin)


# ----------------------------- glue / setup --------------------------------

def build_normalized_adjacency(edge_index, num_nodes):
    """Dense GCN-normalized adjacency: D^-1/2 (A + I) D^-1/2.

    Matches PyG gcn_norm: duplicate edges are summed, self loops are added only
    where missing (add_remaining_self_loops, fill_value=1).
    """
    src, dst = edge_index[0], edge_index[1]
    adj = jnp.zeros((num_nodes, num_nodes), jnp.float32)
    adj = adj.at[dst, src].add(1.0)                     # message src -> dst, duplicates sum
    diag = jnp.diagonal(adj)
    adj = adj + jnp.diag(jnp.where(diag > 0, 0.0, 1.0))  # add remaining self loops
    deg = adj.sum(axis=1)
    dinv = jnp.where(deg > 0, 1.0 / jnp.sqrt(deg), 0.0)
    return adj * dinv[:, None] * dinv[None, :]


def build_pool_matrix(batch, num_graphs):
    """One-hot [G, N] matrix: pool @ h == global_add_pool(h, batch)."""
    return (jnp.arange(num_graphs)[:, None] == batch[None, :]).astype(jnp.float32)


def glorot(key, shape):
    fan_in, fan_out = shape[0], shape[1]
    limit = jnp.sqrt(6.0 / (fan_in + fan_out))
    return jax.random.uniform(key, shape, jnp.float32, -limit, limit)


if __name__ == "__main__":
    key = jax.random.PRNGKey(0)
    k_x, k_e, k_w1, k_wl, k_bl = jax.random.split(key, 5)

    # Small synthetic problem consistent with GNN(in_dim, hid_dim, out_dim).
    N, in_dim, hid_dim, out_dim, G = 16, 8, 32, 8, 2

    x = jax.random.normal(k_x, (N, in_dim), jnp.float32)

    # Random directed edges (duplicates allowed; builder sums them like PyG).
    E = 32
    edge_index = jax.random.randint(k_e, (2, E), 0, N)

    # batch: first half of the nodes -> graph 0, second half -> graph 1.
    batch = jnp.concatenate([jnp.zeros(N // 2, jnp.int32),
                             jnp.ones(N - N // 2, jnp.int32)])

    # Parameters matching the module shapes:
    #   GCNConv(in_dim, hid_dim): weight (in_dim, hid_dim), bias (hid_dim,)
    #   Linear(hid_dim, out_dim): weight (hid_dim, out_dim), bias (out_dim,)
    w1 = glorot(k_w1, (in_dim, hid_dim))
    b1 = jnp.zeros((hid_dim,), jnp.float32)
    wlin = glorot(k_wl, (hid_dim, out_dim))
    blin = jax.random.normal(k_bl, (out_dim,), jnp.float32) * 0.01
    # (attn_pool exists in the module but is unused for agg_method='SUM'.)

    adj_hat = build_normalized_adjacency(edge_index, N)
    pool = build_pool_matrix(batch, G)

    # Pure-JAX reference of the module forward.
    ref = (pool @ (adj_hat @ (x @ w1 + b1[None, :]))) @ wlin + blin[None, :]

    # f32 path (bit-accurate).
    out = gnn_forward(x, w1, b1, adj_hat, pool, wlin, blin)
    out = jax.block_until_ready(out)
    assert out.shape == (G, out_dim)
    assert jnp.allclose(out, ref, atol=1e-4, rtol=1e-4)

    # bf16 aggregation operands (v6e/v7x MXU fast path), f32 accumulation.
    out_bf16 = gnn_forward(x, w1, b1, adj_hat, pool, wlin, blin,
                           agg_dtype=jnp.bfloat16)
    out_bf16 = jax.block_until_ready(out_bf16)
    assert jnp.allclose(out_bf16, ref, atol=5e-2, rtol=5e-2)

    print("KERNEL_OK")
</pallas_src>

<mosaic_0001>
module attributes {stable_mosaic.version = 11 : i64} {
  func.func @gnn_kernel(%arg0: i32, %arg1: memref<2x128xf32, #tpu.memory_space<vmem>>, %arg2: memref<128x8xf32, #tpu.memory_space<vmem>>, %arg3: memref<8x32xf32, #tpu.memory_space<vmem>>, %arg4: memref<1x32xf32, #tpu.memory_space<vmem>>, %arg5: memref<32x8xf32, #tpu.memory_space<vmem>>, %arg6: memref<1x8xf32, #tpu.memory_space<vmem>>, %arg7: memref<2x8xf32, #tpu.memory_space<vmem>>, %arg8: memref<2x32xf32, #tpu.memory_space<vmem>>) attributes {dimension_semantics = [#tpu.dimension_semantics<arbitrary>], iteration_bounds = array<i64: 1>, scalar_prefetch = 0 : i64, scratch_operands = 1 : i64, tpu.core_type = #tpu.core_type<tc>, window_params = [{transform_indices = @transform_0, window_bounds = array<i64: 2, 128>}, {transform_indices = @transform_1, window_bounds = array<i64: 128, 8>}, {pipeline_mode = #tpu.pipeline_mode<synchronous>, transform_indices = @transform_2, window_bounds = array<i64: 8, 32>}, {pipeline_mode = #tpu.pipeline_mode<synchronous>, transform_indices = @transform_3, window_bounds = array<i64: 1, 32>}, {pipeline_mode = #tpu.pipeline_mode<synchronous>, transform_indices = @transform_4, window_bounds = array<i64: 32, 8>}, {pipeline_mode = #tpu.pipeline_mode<synchronous>, transform_indices = @transform_5, window_bounds = array<i64: 1, 8>}, {pipeline_mode = #tpu.pipeline_mode<synchronous>, transform_indices = @transform_6, window_bounds = array<i64: 2, 8>}]} {
    %c0_i32 = arith.constant 0 : i32
    %0 = arith.cmpi eq, %arg0, %c0_i32 : i32
    %1 = arith.extui %0 : i1 to i32
    %c0_i32_0 = arith.constant 0 : i32
    %2 = arith.cmpi ne, %1, %c0_i32_0 : i32
    scf.if %2 {
      %cst_15 = arith.constant 0.000000e+00 : f32
      %17 = vector.broadcast %cst_15 : f32 to vector<2x32xf32>
      %c0_16 = arith.constant 0 : index
      %c0_17 = arith.constant 0 : index
      %18 = vector.load %arg8[%c0_16, %c0_17] : memref<2x32xf32, #tpu.memory_space<vmem>>, vector<2x32xf32>
      tpu.vector_store %arg8[%c0_16, %c0_17], %17 {strides = array<i32>} : memref<2x32xf32, #tpu.memory_space<vmem>>, vector<2x32xf32>,
    } else {
    }
    %c0 = arith.constant 0 : index
    %c0_1 = arith.constant 0 : index
    %3 = vector.load %arg2[%c0, %c0_1] : memref<128x8xf32, #tpu.memory_space<vmem>>, vector<128x8xf32>
    %c0_2 = arith.constant 0 : index
    %c0_3 = arith.constant 0 : index
    %4 = vector.load %arg3[%c0_2, %c0_3] : memref<8x32xf32, #tpu.memory_space<vmem>>, vector<8x32xf32>
    %cst = arith.constant dense<0.000000e+00> : vector<128x32xf32>
    %5 = tpu.matmul %3, %4, %cst {dimension_numbers = #tpu.dot_dimension_numbers<[1], [0], [0], [1], [0, 0, 1, 1], [], []>} : vector<128x8xf32>, vector<8x32xf32>, vector<128x32xf32> -> vector<128x32xf32>
    %c0_4 = arith.constant 0 : index
    %c0_5 = arith.constant 0 : index
    %6 = vector.load %arg4[%c0_4, %c0_5] : memref<1x32xf32, #tpu.memory_space<vmem>>, vector<1x32xf32>
    %7 = vector.broadcast %6 : vector<1x32xf32> to vector<128x32xf32>
    %8 = arith.addf %5, %7 : vector<128x32xf32>
    %c0_6 = arith.constant 0 : index
    %c0_7 = arith.constant 0 : index
    %9 = vector.load %arg1[%c0_6, %c0_7] : memref<2x128xf32, #tpu.memory_space<vmem>>, vector<2x128xf32>
    %c0_8 = arith.constant 0 : index
    %c0_9 = arith.constant 0 : index
    %10 = vector.load %arg8[%c0_8, %c0_9] : memref<2x32xf32, #tpu.memory_space<vmem>>, vector<2x32xf32>
    %cst_10 = arith.constant dense<0.000000e+00> : vector<2x32xf32>
    %11 = tpu.matmul %9, %8, %cst_10 {dimension_numbers = #tpu.dot_dimension_numbers<[1], [0], [0], [1], [0, 0, 1, 1], [], []>} : vector<2x128xf32>, vector<128x32xf32>, vector<2x32xf32> -> vector<2x32xf32>
    %12 = arith.addf %10, %11 : vector<2x32xf32>
    %c0_11 = arith.constant 0 : index
    %c0_12 = arith.constant 0 : index
    %13 = vector.load %arg8[%c0_11, %c0_12] : memref<2x32xf32, #tpu.memory_space<vmem>>, vector<2x32xf32>
    tpu.vector_store %arg8[%c0_11, %c0_12], %12 {strides = array<i32>} : memref<2x32xf32, #tpu.memory_space<vmem>>, vector<2x32xf32>,
    %c0_i32_13 = arith.constant 0 : i32
    %14 = arith.cmpi eq, %arg0, %c0_i32_13 : i32
    %15 = arith.extui %14 : i1 to i32
    %c0_i32_14 = arith.constant 0 : i32
    %16 = arith.cmpi ne, %15, %c0_i32_14 : i32
    scf.if %16 {
      %c0_15 = arith.constant 0 : index
      %c0_16 = arith.constant 0 : index
      %17 = vector.load %arg8[%c0_15, %c0_16] : memref<2x32xf32, #tpu.memory_space<vmem>>, vector<2x32xf32>
      %c0_17 = arith.constant 0 : index
      %c0_18 = arith.constant 0 : index
      %18 = vector.load %arg5[%c0_17, %c0_18] : memref<32x8xf32, #tpu.memory_space<vmem>>, vector<32x8xf32>
      %cst_19 = arith.constant dense<0.000000e+00> : vector<2x8xf32>
      %19 = tpu.matmul %17, %18, %cst_19 {dimension_numbers = #tpu.dot_dimension_numbers<[1], [0], [0], [1], [0, 0, 1, 1], [], []>} : vector<2x32xf32>, vector<32x8xf32>, vector<2x8xf32> -> vector<2x8xf32>
      %c0_20 = arith.constant 0 : index
      %c0_21 = arith.constant 0 : index
      %20 = vector.load %arg6[%c0_20, %c0_21] : memref<1x8xf32, #tpu.memory_space<vmem>>, vector<1x8xf32>
      %21 = vector.broadcast %20 : vector<1x8xf32> to vector<2x8xf32>
      %22 = arith.addf %19, %21 : vector<2x8xf32>
      %c0_22 = arith.constant 0 : index
      %c0_23 = arith.constant 0 : index
      %23 = vector.load %arg7[%c0_22, %c0_23] : memref<2x8xf32, #tpu.memory_space<vmem>>, vector<2x8xf32>
      tpu.vector_store %arg7[%c0_22, %c0_23], %22 {strides = array<i32>} : memref<2x8xf32, #tpu.memory_space<vmem>>, vector<2x8xf32>,
    } else {
    }
    return
  }
  func.func @transform_0(%arg0: i32) -> (i32, i32) {
    %c0_i32 = arith.constant 0 : i32
    %c0_i32_0 = arith.constant 0 : i32
    return %c0_i32, %arg0 : i32, i32
  }
  func.func @transform_1(%arg0: i32) -> (i32, i32) {
    %c0_i32 = arith.constant 0 : i32
    %c0_i32_0 = arith.constant 0 : i32
    return %arg0, %c0_i32 : i32, i32
  }
  func.func @transform_2(%arg0: i32) -> (i32, i32) {
    %c0_i32 = arith.constant 0 : i32
    %c0_i32_0 = arith.constant 0 : i32
    %c0_i32_1 = arith.constant 0 : i32
    return %c0_i32, %c0_i32_0 : i32, i32
  }
  func.func @transform_3(%arg0: i32) -> (i32, i32) {
    %c0_i32 = arith.constant 0 : i32
    %c0_i32_0 = arith.constant 0 : i32
    %c0_i32_1 = arith.constant 0 : i32
    return %c0_i32, %c0_i32_0 : i32, i32
  }
  func.func @transform_4(%arg0: i32) -> (i32, i32) {
    %c0_i32 = arith.constant 0 : i32
    %c0_i32_0 = arith.constant 0 : i32
    %c0_i32_1 = arith.constant 0 : i32
    return %c0_i32, %c0_i32_0 : i32, i32
  }
  func.func @transform_5(%arg0: i32) -> (i32, i32) {
    %c0_i32 = arith.constant 0 : i32
    %c0_i32_0 = arith.constant 0 : i32
    %c0_i32_1 = arith.constant 0 : i32
    return %c0_i32, %c0_i32_0 : i32, i32
  }
  func.func @transform_6(%arg0: i32) -> (i32, i32) {
    %c0_i32 = arith.constant 0 : i32
    %c0_i32_0 = arith.constant 0 : i32
    %c0_i32_1 = arith.constant 0 : i32
    return %c0_i32, %c0_i32_0 : i32, i32
  }
}

</mosaic_0001>

<bundles_post_ra>
// kernel: tpu_custom_call.1
= control target key start
LH: loop header
LB: loop body
LE: loop exit
PB: predicated region body
PF: predicated region fallthrough
CT: control target
= control target key end

     0   :  { %vm51_vm0 = vcmask 64512   ;;  %s423_s0 = inlined_call_operand.vmem [shape: f32[2,128], index: 0, kind: input, shape index: {}]   ;;  %s424_s1 = inlined_call_operand.vmem [shape: f32[128,8], index: 1, kind: input, shape index: {}]   ;;  %s425_s2 = inlined_call_operand.vmem [shape: f32[8,32], index: 2, kind: input, shape index: {}]   ;;  %s426_s3 = inlined_call_operand.vmem [shape: f32[1,32], index: 3, kind: input, shape index: {}]   ;;  %s427_s4 = inlined_call_operand.vmem [shape: f32[32,8], index: 4, kind: input, shape index: {}]   ;;  %s428_s5 = inlined_call_operand.vmem [shape: f32[1,8], index: 5, kind: input, shape index: {}]   ;;  %s429_s6 = inlined_call_operand.hbm [shape: f32[2,8], index: 6, kind: output, shape index: {}]  }
   0x1   :  { %v46_v0 = vld [vmem:[%s425_s2] sm:$0xff]  ;;  %v40_v1 = vld [vmem:[%s424_s1 + $0x50] sm:$0xff] }
   0x2   :  { %262 = vmatpush.msra.mxu3 %v46_v0  ;;  %115 = vmatpush.msra.mxu0 %v46_v0  ;;  %v30_v2 = vld [vmem:[%s424_s1] sm:$0xff]  ;;  %v36_v3 = vld [vmem:[%s424_s1 + $0x30] sm:$0xff] }
   0x3   :  { %254 = vmatmul.msk.f32.vlgmr.msra.gmra.mxu3 %vm51_vm0, %v40_v1  ;;  %244 = vmatmul.msk.f32.vlgmr.msra.gmra.mxu0 %vm51_vm0, %v30_v2 }
   0x4   :  { %261 = vmatpush.msra.mxu2 %v46_v0 }
   0x5   :  { %250 = vmatmul.msk.f32.vlgmr.msra.gmra.mxu2 %vm51_vm0, %v36_v3 }
   0x6   :  { %11 = vsyncpa [#allocation4], 0  ;;  %v41_v4 = vld [vmem:[%s424_s1 + $0x58] sm:$0xff]  ;;  %v31_v5 = vld [vmem:[%s424_s1 + $0x8] sm:$0xff]  ;;  %vm28_vm1 = vcmask 254976   ;;  %v293_v35 = vmov 0.0  }
   0x7   :  { %v37_v6 = vld [vmem:[%s424_s1 + $0x38] sm:$0xff]  ;;  %v42_v7 = vld [vmem:[%s424_s1 + $0x60] sm:$0xff]  ;;  %v32_v8 = vld [vmem:[%s424_s1 + $0x10] sm:$0xff]  ;;  %29 = vst.msk [vmem:[#allocation2] sm:$0x3] %vm28_vm1, %v293_v35  ;;  %vm202_vm2 = vcmask 261120  }
   0x8   :  { %v38_v9 = vld [vmem:[%s424_s1 + $0x40] sm:$0xff]  ;;  %v43_v10 = vld [vmem:[%s424_s1 + $0x68] sm:$0xff]  ;;  %v33_v11 = vld [vmem:[%s424_s1 + $0x18] sm:$0xff]  ;;  %s235_s20 = sshll.u32 %s429_s6, 4  ;;  %vm226_vm3 = vcmask 58368   ;;  %s236_s20 = int_to_ptr.hbm [resolvable:$true] %s235_s20 }
   0x9   :  { %v39_v12 = vld [vmem:[%s424_s1 + $0x48] sm:$0xff]  ;;  %v44_v13 = vld [vmem:[%s424_s1 + $0x70] sm:$0xff]  ;;  %v34_v14 = vld [vmem:[%s424_s1 + $0x20] sm:$0xff] }
   0xa   :  { %v45_v15 = vld [vmem:[%s424_s1 + $0x78] sm:$0xff]  ;;  %v35_v16 = vld [vmem:[%s424_s1 + $0x28] sm:$0xff]  ;;  %v265_v29 = vld [vmem:[%s426_s3] ss:$0 sm:$0xff] }
   0xb   :  { %255 = vmatmul.msk.f32.gmra.mxu3 %vm51_vm0, %v41_v4  ;;  %245 = vmatmul.msk.f32.gmra.mxu0 %vm51_vm0, %v31_v5  ;;  %v197_v32 = vld [vmem:[%s427_s4 + $0x18] sm:$0xff]  ;;  %v196_v33 = vld [vmem:[%s427_s4 + $0x10] sm:$0xff]  ;;  %v195_v36 = vld [vmem:[%s427_s4 + $0x8] sm:$0xff] }
   0xc   :  { %218 = vmatpush.msrb.mxu2 %v197_v32  ;;  %v165_v54 = vld [vmem:[%s423_s0] sm:$0x3]  ;;  %s294_s0 = smov [#allocation3]  }
   0xd   :  { %251 = vmatmul.msk.f32.gmra.mxu2 %vm51_vm0, %v37_v6  ;;  %v194_v55 = vld [vmem:[%s427_s4] sm:$0xff]  ;;  %s233_s17 = sshll.u32 %s294_s0, 4  ;;  %s234_s17 = int_to_ptr.vmem [resolvable:$true] %s233_s17 }
   0xe   :  { %219 = vmatpush.msrb.mxu2 %v196_v33  ;;  %v166_v56 = vld [vmem:[#allocation2] sm:$0x3] }
   0xf   :  { %v266_v60 = vld [vmem:[%s428_s5] ss:$0 sm:$0xff] }
  0x10   :  { %220 = vmatpush.msrb.mxu2 %v195_v36 }
  0x12   :  { %221 = vmatpush.msrb.mxu2 %v194_v55 }
  0x13   :  { %256 = vmatmul.msk.f32.gmra.mxu3 %vm51_vm0, %v42_v7  ;;  %246 = vmatmul.msk.f32.gmra.mxu0 %vm51_vm0, %v32_v8 }
  0x15   :  { %252 = vmatmul.msk.f32.gmra.mxu2 %vm51_vm0, %v38_v9 }
  0x1b   :  { %257 = vmatmul.msk.f32.gmra.mxu3 %vm51_vm0, %v43_v10  ;;  %247 = vmatmul.msk.f32.gmra.mxu0 %vm51_vm0, %v33_v11 }
  0x1d   :  { %253 = vmatmul.msk.f32.gmra.mxu2 %vm51_vm0, %v39_v12 }
  0x23   :  { %258 = vmatmul.msk.f32.gmra.mxu3 %vm51_vm0, %v44_v13  ;;  %248 = vmatmul.msk.f32.gmra.mxu0 %vm51_vm0, %v34_v14 }
  0x2b   :  { %259 = vmatmul.msk.f32.gmra.mxu3 %vm51_vm0, %v45_v15  ;;  %249 = vmatmul.msk.f32.gmra.mxu0 %vm51_vm0, %v35_v16 }
  0x80   :  { %v117_v18 = vpop.f32.mrf.mxu0 }
  0x81   :  { %v118_v53 = vadd.f32 %v265_v29, %v117_v18 }
  0x86   :  { %v147_v17 = vpop.f32.mrf.mxu3 }
  0x87   :  { %v148_v42 = vadd.f32 %v265_v29, %v147_v17 }
  0x88   :  { %v120_v21 = vpop.f32.mrf.mxu0  ;;  %v135_v22 = vpop.f32.mrf.mxu2 }
  0x89   :  { %v136_v47 = vadd.f32 %v265_v29, %v135_v22  ;;  %v121_v52 = vadd.f32 %v265_v29, %v120_v21 }
  0x8e   :  { %v150_v19 = vpop.f32.mrf.mxu3 }
  0x8f   :  { %v151_v41 = vadd.f32 %v265_v29, %v150_v19 }
  0x90   :  { %v123_v24 = vpop.f32.mrf.mxu0  ;;  %v138_v25 = vpop.f32.mrf.mxu2 }
  0x91   :  { %v139_v46 = vadd.f32 %v265_v29, %v138_v25  ;;  %v124_v51 = vadd.f32 %v265_v29, %v123_v24 }
  0x96   :  { %v153_v20 = vpop.f32.mrf.mxu3 }
  0x97   :  { %v154_v39 = vadd.f32 %v265_v29, %v153_v20 }
  0x98   :  { %v126_v27 = vpop.f32.mrf.mxu0  ;;  %v141_v28 = vpop.f32.mrf.mxu2 }
  0x99   :  { %v142_v44 = vadd.f32 %v265_v29, %v141_v28  ;;  %v127_v50 = vadd.f32 %v265_v29, %v126_v27 }
  0x9e   :  { %v156_v23 = vpop.f32.mrf.mxu3 }
  0x9f   :  { %v157_v37 = vadd.f32 %v265_v29, %v156_v23 }
  0xa0   :  { %v129_v38 = vpop.f32.mrf.mxu0  ;;  %v144_v40 = vpop.f32.mrf.mxu2 }
  0xa1   :  { %v145_v43 = vadd.f32 %v265_v29, %v144_v40  ;;  %v130_v49 = vadd.f32 %v265_v29, %v129_v38 }
  0xa6   :  { %v159_v26 = vpop.f32.mrf.mxu3 }
  0xa7   :  { %v160_v34 = vadd.f32 %v265_v29, %v159_v26 }
  0xa8   :  { %v132_v45 = vpop.f32.mrf.mxu0 }
  0xa9   :  { %v133_v48 = vadd.f32 %v265_v29, %v132_v45 }
  0xae   :  { %v162_v30 = vpop.f32.mrf.mxu3 }
  0xaf   :  { %v163_v31 = vadd.f32 %v265_v29, %v162_v30 }
  0xb1   :  { %167 = vmatpush.msra.mxu1 %v163_v31 }
  0xb3   :  { %168 = vmatpush.msra.mxu1 %v160_v34 }
  0xb5   :  { %169 = vmatpush.msra.mxu1 %v157_v37 }
  0xb7   :  { %170 = vmatpush.msra.mxu1 %v154_v39 }
  0xb9   :  { %171 = vmatpush.msra.mxu1 %v151_v41 }
  0xbb   :  { %172 = vmatpush.msra.mxu1 %v148_v42 }
  0xbd   :  { %173 = vmatpush.msra.mxu1 %v145_v43 }
  0xbf   :  { %174 = vmatpush.msra.mxu1 %v142_v44 }
  0xc1   :  { %175 = vmatpush.msra.mxu1 %v139_v46 }
  0xc3   :  { %176 = vmatpush.msra.mxu1 %v136_v47 }
  0xc5   :  { %177 = vmatpush.msra.mxu1 %v133_v48 }
  0xc7   :  { %178 = vmatpush.msra.mxu1 %v130_v49 }
  0xc9   :  { %179 = vmatpush.msra.mxu1 %v127_v50 }
  0xcb   :  { %180 = vmatpush.msra.mxu1 %v124_v51 }
  0xcd   :  { %181 = vmatpush.msra.mxu1 %v121_v52 }
  0xcf   :  { %182 = vmatpush.msra.mxu1 %v118_v53 }
  0xd0   :  { %183 = vmatmul.f32.vlgmr.msra.gmra.mxu1 %v165_v54 }
 0x14d   :  { %v184_v57 = vpop.f32.mrf.mxu1 }
 0x14e   :  { %v187_v58 = vadd.f32 %v184_v57, %v166_v56 }
 0x150   :  { %189 = vst.msk [vmem:[#allocation2] sm:$0x3] %vm28_vm1, %v187_v58 }
 0x157   :  { %v193_v59 = vld [vmem:[#allocation2] sm:$0x3] }
 0x158   :  { %260 = vmatmul.msk.f32.vlgmr.msrb.gmra.mxu2 %vm202_vm2, %v193_v59 }
 0x1db   :  { %v223_v61 = vpop.f32.mrf.mxu2 }
 0x1dc   :  { %v224_v62 = vadd.f32 %v266_v60, %v223_v61 }
 0x1de   :  { %227 = vst.msk [vmem:[#allocation3] sm:$0x3] %vm226_vm3, %v224_v62 }
 0x1df   :  { %238 = dma.vmem_to_hbm [thread:$0]  %s234_s17, 32, %s236_s20, [#allocation4]  }
 0x1e0   :  { %291 = dma.done.wait [#allocation4], 32  }
 0x1e1   :  { %292 = vsyncadd [#allocation4], 4294967264 }
 0x1e2   :  { %243 = vsyncpa [#allocation4], 1 }

</bundles_post_ra>
